<compile_context>
chip_gen: v7x
topology: tpu7x:2x2x1
jax: 0.10.0
libtpu: 0.0.40
codegen_flags: <defaults>
</compile_context>

<pallas_src>
import numpy as np
import jax
import jax.numpy as jnp
from jax.experimental import pallas as pl
from jax.experimental.pallas import tpu as pltpu


def same_padding_params(in_shape, kernel_size, stride, dilation=(1, 1)):
    """Replicates get_same_padding() for a non-transposed conv and returns the total
    per-dim (before, after) padding exactly as PyTorch applies it (sym padding on the conv,
    unsym padding through F.pad which consumes pairs last-dim-first)."""
    in_spatial = np.asarray(in_shape)[1:]
    ks = np.asarray(kernel_size)
    st = np.asarray(stride)
    dil = np.asarray(dilation)
    output_size = (in_spatial + st - 1) // st
    padding_input = np.maximum(0, (output_size - 1) * st + (ks - 1) * dil + 1 - in_spatial)
    odd = padding_input % 2 != 0
    sym = tuple(padding_input // 2)
    unsym = [y for x in odd for y in [0, int(x)]]  # dim-order (H, W) pairs

    ndim = len(in_spatial)
    pads = []
    for d in range(ndim):
        pair_idx = ndim - 1 - d  # F.pad applies the first pair to the LAST dim
        u_before, u_after = unsym[2 * pair_idx], unsym[2 * pair_idx + 1]
        pads.append((int(sym[d]) + u_before, int(sym[d]) + u_after))
    return pads, tuple(int(o) for o in output_size)


def normed_same_conv2d(x_nchw, weight_v, weight_g, bias, stride, pads_hw):
    """Weight-normalized, same-padded 2D conv.
    x_nchw: (B,Cin,H,W), weight_v: (Cout,Cin,KH,KW), weight_g: (Cout,1,1,1), bias: (Cout,)."""
    B, Cin, H, W = x_nchw.shape
    Cout, _, KH, KW = weight_v.shape
    sH, sW = stride
    (ph0, ph1), (pw0, pw1) = pads_hw

    Hp, Wp = H + ph0 + ph1, W + pw0 + pw1
    Ho = (Hp - KH) // sH + 1
    Wo = (Wp - KW) // sW + 1
    M = B * Ho * Wo                      # flattened output pixels, m = ho*(B*Wo) + b*Wo + wo
    K = KH * KW * Cin                    # contraction dim, k = kh*(KW*Cin) + kw*Cin + c
    K_pad = ((K + 7) // 8) * 8           # pad contraction to a multiple of 8 sublanes

    # ---- wrapper glue: padding + im2col slab (k = (kh, kw, c), m = (ho, b, wo)) ----
    # A[k, m] = xp[b, c, sH*ho + kh, sW*wo + kw]
    xp = jnp.pad(x_nchw, ((0, 0), (0, 0), (ph0, ph1), (pw0, pw1)))
    patches = []
    for kh in range(KH):
        for kw in range(KW):
            patches.append(xp[:, :, kh: kh + sH * (Ho - 1) + 1: sH,
                               kw: kw + sW * (Wo - 1) + 1: sW])   # (B, Cin, Ho, Wo)
    A = jnp.stack(patches, axis=0)                 # (KH*KW, B, Cin, Ho, Wo)
    A = jnp.transpose(A, (0, 2, 3, 1, 4))          # (KH*KW, Cin, Ho, B, Wo)
    A = A.reshape(K, M)
    A = jnp.pad(A, ((0, K_pad - K), (0, 0)))       # (K_pad, M)

    # weight_v (Cout,Cin,KH,KW) -> (Cout, KH*KW*Cin), matching A's k ordering, K-padded
    wv = jnp.transpose(weight_v, (0, 2, 3, 1)).reshape(Cout, K)
    wv = jnp.pad(wv, ((0, 0), (0, K_pad - K)))     # (Cout, K_pad)
    g2 = weight_g.reshape(Cout, 1)
    b2 = bias.reshape(Cout, 1)

    # ---- fused Pallas kernel: weight-norm + single MXU matmul + bias ----
    def kernel(a_ref, v_ref, g_ref, bias_ref, o_ref):
        # Weight normalization: w = g * v / ||v||_2  (padded zero columns contribute nothing)
        v = v_ref[...]                                           # (Cout, K_pad)
        ssq = jnp.sum(v * v, axis=1, keepdims=True)              # lane reduce -> (Cout, 1)
        w = v * (g_ref[...] * jax.lax.rsqrt(ssq))                # (Cout, K_pad)
        # One (Cout, K_pad) x (K_pad, M) matmul; bias fused into the result (no zeros/+=)
        out = jnp.dot(w, a_ref[...],
                      preferred_element_type=jnp.float32,
                      precision=jax.lax.Precision.HIGHEST) + bias_ref[...]
        # (Cout, M) = (8, 128): lane-dense, unmasked store
        o_ref[...] = out.astype(o_ref.dtype)

    out = pl.pallas_call(
        kernel,
        out_shape=jax.ShapeDtypeStruct((Cout, M), x_nchw.dtype),
        grid=(1,),   # M=128 fits one block; tile this axis (weights/bias stay resident) at scale
        in_specs=[
            pl.BlockSpec((K_pad, M), lambda i: (0, 0)),
            pl.BlockSpec((Cout, K_pad), lambda i: (0, 0)),
            pl.BlockSpec((Cout, 1), lambda i: (0, 0)),
            pl.BlockSpec((Cout, 1), lambda i: (0, 0)),
        ],
        out_specs=pl.BlockSpec((Cout, M), lambda i: (0, 0)),
        compiler_params=pltpu.CompilerParams(dimension_semantics=("parallel",)),
        cost_estimate=pl.CostEstimate(
            flops=2 * K_pad * Cout * M,
            transcendentals=Cout,
            bytes_accessed=4 * (A.size + wv.size + g2.size + b2.size + Cout * M)),
    )(A, wv, g2, b2)

    # (Cout, M) with m = ho*(B*Wo) + b*Wo + wo  ->  NCHW
    y = out.reshape(Cout, Ho, B, Wo)
    return jnp.transpose(y, (2, 0, 1, 3))


if __name__ == "__main__":
    key = jax.random.PRNGKey(0)
    kx, kv, kg, kb = jax.random.split(key, 4)

    # Module config: in_shape=(4,16,16), conv=nn.Conv2d(4, 8, kernel_size=3, stride=2), weightnorm
    B, Cin, H, W = 2, 4, 16, 16
    Cout, KH, KW = 8, 3, 3
    stride = (2, 2)

    x = jax.random.normal(kx, (B, Cin, H, W), dtype=jnp.float32)
    # Deterministic synthetic weight-norm parameters (PyTorch shapes)
    weight_v = jax.random.normal(kv, (Cout, Cin, KH, KW), dtype=jnp.float32) * 0.1
    weight_g = 1.0 + 0.1 * jax.random.normal(kg, (Cout, 1, 1, 1), dtype=jnp.float32)
    bias = jax.random.normal(kb, (Cout,), dtype=jnp.float32) * 0.1

    pads, out_spatial = same_padding_params((Cin, H, W), (KH, KW), stride)

    y = normed_same_conv2d(x, weight_v, weight_g, bias, stride, pads)
    y = jax.block_until_ready(y)

    # Pure-JAX reference: weight-norm + identical same-padding conv semantics.
    vnorm = jnp.sqrt(jnp.sum(weight_v * weight_v, axis=(1, 2, 3), keepdims=True))
    w_eff = weight_g * weight_v / vnorm
    y_ref = jax.lax.conv_general_dilated(
        x, w_eff, window_strides=stride, padding=pads,
        dimension_numbers=("NCHW", "OIHW", "NCHW"),
        precision=jax.lax.Precision.HIGHEST,
    ) + bias[None, :, None, None]

    assert y.shape == (B, Cout, H // stride[0], W // stride[1]), y.shape
    np.testing.assert_allclose(np.asarray(y), np.asarray(y_ref), rtol=1e-4, atol=1e-4)
    print("KERNEL_OK")
</pallas_src>

<mosaic_0001>
module attributes {stable_mosaic.version = 11 : i64} {
  func.func @kernel(%arg0: i32, %arg1: memref<40x128xf32, #tpu.memory_space<vmem>>, %arg2: memref<8x40xf32, #tpu.memory_space<vmem>>, %arg3: memref<8x1xf32, #tpu.memory_space<vmem>>, %arg4: memref<8x1xf32, #tpu.memory_space<vmem>>, %arg5: memref<8x128xf32, #tpu.memory_space<vmem>>) attributes {dimension_semantics = [#tpu.dimension_semantics<parallel>], iteration_bounds = array<i64: 1>, scalar_prefetch = 0 : i64, scratch_operands = 0 : i64, tpu.core_type = #tpu.core_type<tc>, window_params = [{pipeline_mode = #tpu.pipeline_mode<synchronous>, transform_indices = @transform_0, window_bounds = array<i64: 40, 128>}, {pipeline_mode = #tpu.pipeline_mode<synchronous>, transform_indices = @transform_1, window_bounds = array<i64: 8, 40>}, {pipeline_mode = #tpu.pipeline_mode<synchronous>, transform_indices = @transform_2, window_bounds = array<i64: 8, 1>}, {pipeline_mode = #tpu.pipeline_mode<synchronous>, transform_indices = @transform_3, window_bounds = array<i64: 8, 1>}, {pipeline_mode = #tpu.pipeline_mode<synchronous>, transform_indices = @transform_4, window_bounds = array<i64: 8, 128>}]} {
    %c0 = arith.constant 0 : index
    %c0_0 = arith.constant 0 : index
    %0 = vector.load %arg2[%c0, %c0_0] : memref<8x40xf32, #tpu.memory_space<vmem>>, vector<8x40xf32>
    %1 = arith.mulf %0, %0 : vector<8x40xf32>
    %cst = arith.constant dense<0.000000e+00> : vector<8xf32>
    %2 = vector.multi_reduction <add>, %1, %cst [1] : vector<8x40xf32> to vector<8xf32>
    %3 = vector.shape_cast %2 : vector<8xf32> to vector<8x1xf32>
    %c0_1 = arith.constant 0 : index
    %c0_2 = arith.constant 0 : index
    %4 = vector.load %arg3[%c0_1, %c0_2] : memref<8x1xf32, #tpu.memory_space<vmem>>, vector<8x1xf32>
    %5 = math.rsqrt %3 : vector<8x1xf32>
    %6 = arith.mulf %4, %5 : vector<8x1xf32>
    %7 = vector.broadcast %6 : vector<8x1xf32> to vector<8x40xf32>
    %8 = arith.mulf %0, %7 : vector<8x40xf32>
    %c0_3 = arith.constant 0 : index
    %c0_4 = arith.constant 0 : index
    %9 = vector.load %arg1[%c0_3, %c0_4] : memref<40x128xf32, #tpu.memory_space<vmem>>, vector<40x128xf32>
    %cst_5 = arith.constant dense<0.000000e+00> : vector<8x128xf32>
    %10 = tpu.matmul %8, %9, %cst_5 {dimension_numbers = #tpu.dot_dimension_numbers<[1], [0], [0], [1], [0, 0, 1, 1], [], []>, precision = #tpu.contract_precision<fp32>} : vector<8x40xf32>, vector<40x128xf32>, vector<8x128xf32> -> vector<8x128xf32>
    %c0_6 = arith.constant 0 : index
    %c0_7 = arith.constant 0 : index
    %11 = vector.load %arg4[%c0_6, %c0_7] : memref<8x1xf32, #tpu.memory_space<vmem>>, vector<8x1xf32>
    %12 = vector.broadcast %11 : vector<8x1xf32> to vector<8x128xf32>
    %13 = arith.addf %10, %12 : vector<8x128xf32>
    %c0_8 = arith.constant 0 : index
    %c0_9 = arith.constant 0 : index
    %14 = vector.load %arg5[%c0_8, %c0_9] : memref<8x128xf32, #tpu.memory_space<vmem>>, vector<8x128xf32>
    tpu.vector_store %arg5[%c0_8, %c0_9], %13 {strides = array<i32>} : memref<8x128xf32, #tpu.memory_space<vmem>>, vector<8x128xf32>,
    return
  }
  func.func @transform_0(%arg0: i32) -> (i32, i32) {
    %c0_i32 = arith.constant 0 : i32
    %c0_i32_0 = arith.constant 0 : i32
    %c0_i32_1 = arith.constant 0 : i32
    return %c0_i32, %c0_i32_0 : i32, i32
  }
  func.func @transform_1(%arg0: i32) -> (i32, i32) {
    %c0_i32 = arith.constant 0 : i32
    %c0_i32_0 = arith.constant 0 : i32
    %c0_i32_1 = arith.constant 0 : i32
    return %c0_i32, %c0_i32_0 : i32, i32
  }
  func.func @transform_2(%arg0: i32) -> (i32, i32) {
    %c0_i32 = arith.constant 0 : i32
    %c0_i32_0 = arith.constant 0 : i32
    %c0_i32_1 = arith.constant 0 : i32
    return %c0_i32, %c0_i32_0 : i32, i32
  }
  func.func @transform_3(%arg0: i32) -> (i32, i32) {
    %c0_i32 = arith.constant 0 : i32
    %c0_i32_0 = arith.constant 0 : i32
    %c0_i32_1 = arith.constant 0 : i32
    return %c0_i32, %c0_i32_0 : i32, i32
  }
  func.func @transform_4(%arg0: i32) -> (i32, i32) {
    %c0_i32 = arith.constant 0 : i32
    %c0_i32_0 = arith.constant 0 : i32
    %c0_i32_1 = arith.constant 0 : i32
    return %c0_i32, %c0_i32_0 : i32, i32
  }
}

</mosaic_0001>

<bundles_post_ra>
// kernel: tpu_custom_call.1
= control target key start
LH: loop header
LB: loop body
LE: loop exit
PB: predicated region body
PF: predicated region fallthrough
CT: control target
= control target key end

     0   :  { %9 = vsyncpa [#allocation3], 0  ;;  %s934_s0 = inlined_call_operand.hbm [shape: f32[40,128], index: 0, kind: input, shape index: {}]   ;;  %s935_s1 = inlined_call_operand.vmem [shape: f32[8,40], index: 1, kind: input, shape index: {}]   ;;  %s936_s2 = inlined_call_operand.vmem [shape: f32[8,1], index: 2, kind: input, shape index: {}]   ;;  %s937_s3 = inlined_call_operand.vmem [shape: f32[8,1], index: 3, kind: input, shape index: {}]   ;;  %s938_s4 = inlined_call_operand.hbm [shape: f32[8,128], index: 4, kind: output, shape index: {}]  }
   0x1   :  { %10 = vsyncpa [#allocation4], 0  ;;  %s795_s15 = smov [#allocation2]   ;;  %s747_s19 = scalar_lea.hbm %s934_s0, 640 }
   0x2   :  { %s16_s16 = sshll.u32 %s795_s15, 4  ;;  %p748_p0 = scmp.ne.s32.totalorder %s934_s0, %s747_s19  ;;  %s17_s16 = int_to_ptr.vmem [resolvable:$true] %s16_s16 }
   0x3   :  { %p751_p1 = scmp.lt.u32.totalorder %s747_s19, %s934_s0 }
   0x5   :  { %p753_p2 = pnand %p751_p1, %p748_p0 }
   0x7   :  { %756 = shalt.err (!%p753_p2)
}
   0x8   :  { %s757_s24 = scalar_lea.vmem %s17_s16, 640  ;;  %p762_p4 = scmp.lt.s32.totalorder %s17_s16, %s17_s16 }
   0x9   :  { %p758_p3 = scmp.ne.s32.totalorder %s17_s16, %s757_s24  ;;  %p763_p5 = scmp.lt.s32.totalorder %s757_s24, %s757_s24 }
   0xb   :  { %p764_p6 = por %p763_p5, %p762_p4 }
   0xd   :  { %p765_p7 = pnand %p764_p6, %p758_p3 }
   0xf   :  { %768 = shalt.err (!%p765_p7)
}
  0x10   :  { %s796_s25 = smov 128   ;;  %s797_s26 = smov 8  }
  0x11   :  { %22 = dma.hbm_to_vmem [thread:$0]  %s934_s0, 640, %s17_s16, [#allocation3], %s796_s25, %s796_s25, %s797_s26  }
  0x12   :  { %791 = dma.done.wait [#allocation3], 640  }
  0x13   :  { %792 = vsyncadd [#allocation3], 4294966656  ;;  %v843_v0 = vld [vmem:[%s935_s1] sm:$0xff]  ;;  %vm34_vm0 = vcmask 326656   ;;  %v798_v3 = vmov 0   ;;  %v48_v5 = vld [vmem:[#allocation2 + $0x8] sm:$0xff] }
  0x14   :  { %v33_v1 = vmul.f32 %v843_v0, %v843_v0  ;;  %743 = vset.pattern.permute.xlu0 %v798_v3  ;;  %744 = vset.pattern.permute.xlu1 %v798_v3  ;;  %v47_v4 = vld [vmem:[#allocation2] sm:$0xff]  ;;  %v799_v6 = vmov 0.0|0.0   ;;  %v65_v8 = vand.u32 4294901760, %v48_v5  ;;  %v49_v16 = vld [vmem:[#allocation2 + $0x10] sm:$0xff]  ;;  %v50_v17 = vld [vmem:[#allocation2 + $0x18] sm:$0xff]  ;;  %v800_v25 = vmov 0.0  }
  0x15   :  { %707 = vmatprep.subr.bf16.mxu0 %v799_v6  ;;  %v62_v7 = vand.u32 4294901760, %v47_v4  ;;  %689 = vmatprep.subr.bf16.mxu1 %v799_v6  ;;  %v38_v13 = vld [vmem:[%s936_s2] sm:$0xff]  ;;  %v68_v18 = vand.u32 4294901760, %v49_v16  ;;  %v71_v19 = vand.u32 4294901760, %v50_v17  ;;  %vm801_vm1 = vmmov 0  }
  0x16   :  { %v35_v2 = vsel %vm34_vm0, %v33_v1, 0.0  ;;  %v854_v11 = vsub.f32 %v48_v5, %v65_v8  ;;  %v51_v21 = vld [vmem:[#allocation2 + $0x20] sm:$0xff]  ;;  %660 = vmatprep.mubr.msk.f32.mxu0 %vm801_vm1, %v800_v25  ;;  %621 = vmatprep.mubr.msk.f32.mxu1 %vm801_vm1, %v800_v25 }
  0x17   :  { %36 = vadd.xlane.f32.xlu0 %v35_v2  ;;  %v850_v9 = vpack.c.bf16 %v65_v8, %v62_v7  ;;  %v852_v10 = vsub.f32 %v47_v4, %v62_v7  ;;  %v863_v20 = vpack.c.bf16 %v71_v19, %v68_v18  ;;  %v867_v22 = vsub.f32 %v49_v16, %v68_v18  ;;  %v52_v44 = vld [vmem:[%s937_s3] sm:$0xff]  ;;  %s802_s3 = smov [#allocation5]  }
  0x18   :  { %v869_v23 = vsub.f32 %v50_v17, %v71_v19  ;;  %v871_v24 = vand.u32 4294901760, %v51_v21  ;;  %v151_v27 = vand.u32 4294901760, %v854_v11  ;;  %55 = vperm.xlu1 %744, %v52_v44   ;;  %s566_s6 = sshll.u32 %s802_s3, 4  ;;  %s567_s6 = int_to_ptr.vmem [resolvable:$true] %s566_s6 }
  0x19   :  { %709 = vmatpush3.bf16.msra.mxu0 %v850_v9  ;;  %691 = vmatpush3.bf16.msra.mxu1 %v850_v9  ;;  %v144_v26 = vand.u32 4294901760, %v852_v10  ;;  %v158_v33 = vand.u32 4294901760, %v867_v22  ;;  %v702_v42 = vpack.c.bf16 %v854_v11, %v852_v10  ;;  %s769_s7 = scalar_lea.vmem %s567_s6, 128  ;;  %p774_p9 = scmp.lt.s32.totalorder %s567_s6, %s567_s6 }
  0x1a   :  { %710 = vmatprep.subr.bf16.mxu0 %v799_v6  ;;  %692 = vmatprep.subr.bf16.mxu1 %v799_v6  ;;  %v152_v30 = vsub.f32 %v854_v11, %v151_v27  ;;  %v165_v34 = vand.u32 4294901760, %v869_v23  ;;  %v705_v43 = vpack.c.bf16 %v869_v23, %v867_v22  ;;  %v171_v50 = vsub.f32 %v51_v21, %v871_v24  ;;  %p770_p8 = scmp.ne.s32.totalorder %s567_s6, %s769_s7  ;;  %p775_p10 = scmp.lt.s32.totalorder %s769_s7, %s769_s7 }
  0x1b   :  { %v714_v28 = vpack.c.bf16 %v151_v27, %v144_v26  ;;  %v145_v29 = vsub.f32 %v852_v10, %v144_v26  ;;  %v159_v37 = vsub.f32 %v867_v22, %v158_v33 }
  0x1c   :  { %v153_v32 = vand.u32 4294901760, %v152_v30  ;;  %v717_v36 = vpack.c.bf16 %v165_v34, %v158_v33  ;;  %v166_v38 = vsub.f32 %v869_v23, %v165_v34  ;;  %v172_v53 = vand.u32 4294901760, %v171_v50  ;;  %p776_p11 = por %p775_p10, %p774_p9 }
  0x1d   :  { %712 = vmatpush3.bf16.msra.mxu0 %v863_v20  ;;  %694 = vmatpush3.bf16.msra.mxu1 %v863_v20  ;;  %v146_v31 = vand.u32 4294901760, %v145_v29  ;;  %v160_v39 = vand.u32 4294901760, %v159_v37 }
  0x1e   :  { %658 = vmatprep.subr.mxu0 %v800_v25  ;;  %619 = vmatprep.subr.mxu1 %v800_v25  ;;  %v167_v40 = vand.u32 4294901760, %v166_v38  ;;  %v173_v55 = vsub.f32 %v171_v50, %v172_v53  ;;  %p777_p12 = pnand %p776_p11, %p770_p8 }
  0x1f   :  { %v696_v35 = vpack.c.bf16 %v153_v32, %v146_v31 }
  0x20   :  { %v699_v41 = vpack.c.bf16 %v167_v40, %v160_v39  ;;  %v174_v56 = vand.u32 4294901760, %v173_v55 }
  0x21   :  { %659 = vmatpush3.msra.mxu0 %v871_v24  ;;  %620 = vmatpush3.msra.mxu1 %v871_v24 }
  0x22   :  { %713 = vmatprep.subr.bf16.mxu0 %v799_v6  ;;  %695 = vmatprep.subr.bf16.mxu1 %v799_v6 }
  0x97   :  { %v56_v59 = vpop.permute.xlu1 %55 }
  0xa4   :  { %v37_v12 = vpop.xlane.xlu0 %36 }
  0xa5   :  { %745 = vrsqrt.f32 %v37_v12 }
  0xaf   :  { %v746_v14 = vpop.eup %745 }
  0xb0   :  { %v40_v15 = vmul.f32 %v746_v14, %v38_v13 }
  0xb2   :  { %43 = vperm.xlu0 %743, %v40_v15  }
 0x131   :  { %v44_v45 = vpop.permute.xlu0 %43 }
 0x132   :  { %v46_v46 = vmul.f32 %v44_v45, %v843_v0 }
 0x134   :  { %v59_v47 = vsel %vm34_vm0, %v46_v46, 0 }
 0x135   :  { %v131_v48 = vand.u32 4294901760, %v59_v47 }
 0x137   :  { %v132_v49 = vsub.f32 %v59_v47, %v131_v48 }
 0x139   :  { %v133_v51 = vand.u32 4294901760, %v132_v49 }
 0x13b   :  { %661 = vmatmul.mubr.f32.vlgmr.msra.gmra.mrb[0].mxu0 %v133_v51  ;;  %v134_v52 = vsub.f32 %v132_v49, %v133_v51 }
 0x13c   :  { %715 = vmatpush3.bf16.msra.mxu0 %v714_v28  ;;  %673 = vmatprep.mubr.msk.f32.mxu0 %vm801_vm1, %v800_v25 }
 0x13d   :  { %716 = vmatprep.subr.bf16.mxu0 %v799_v6  ;;  %v135_v54 = vand.u32 4294901760, %v134_v52 }
 0x13f   :  { %622 = vmatmul.mubr.f32.vlgmr.msra.gmra.mrb[0].mxu1 %v135_v54 }
 0x140   :  { %697 = vmatpush3.bf16.msra.mxu1 %v696_v35  ;;  %718 = vmatpush3.bf16.msra.mxu0 %v717_v36 }
 0x141   :  { %698 = vmatprep.subr.bf16.mxu1 %v799_v6  ;;  %671 = vmatprep.subr.mxu0 %v800_v25 }
 0x142   :  { %634 = vmatprep.mubr.msk.f32.mxu1 %vm801_vm1, %v800_v25 }
 0x144   :  { %700 = vmatpush3.bf16.msra.mxu1 %v699_v41  ;;  %672 = vmatpush3.msra.mxu0 %v172_v53 }
 0x145   :  { %674 = vmatmul.mubr.f32.vlgmr.msra.gmra.mrb[0].mxu0 %v131_v48  ;;  %719 = vmatprep.subr.bf16.mxu0 %v799_v6 }
 0x146   :  { %721 = vmatpush3.bf16.msra.mxu0 %v850_v9  ;;  %632 = vmatprep.subr.mxu1 %v800_v25 }
 0x147   :  { %722 = vmatprep.subr.bf16.mxu0 %v799_v6  ;;  %686 = vmatprep.mubr.msk.f32.mxu0 %vm801_vm1, %v800_v25 }
 0x148   :  { %633 = vmatpush3.msra.mxu1 %v174_v56 }
 0x149   :  { %635 = vmatmul.mubr.f32.vlgmr.msra.gmra.mrb[0].mxu1 %v131_v48  ;;  %701 = vmatprep.subr.bf16.mxu1 %v799_v6 }
 0x14a   :  { %703 = vmatpush3.bf16.msra.mxu1 %v702_v42  ;;  %724 = vmatpush3.bf16.msra.mxu0 %v863_v20 }
 0x14b   :  { %704 = vmatprep.subr.bf16.mxu1 %v799_v6  ;;  %684 = vmatprep.subr.mxu0 %v800_v25 }
 0x14c   :  { %647 = vmatprep.mubr.msk.f32.mxu1 %vm801_vm1, %v800_v25 }
 0x14e   :  { %706 = vmatpush3.bf16.msra.mxu1 %v705_v43  ;;  %685 = vmatpush3.msra.mxu0 %v871_v24 }
 0x14f   :  { %687 = vmatmul.mubr.f32.vlgmr.msra.gmra.mrb[0].mxu0 %v131_v48  ;;  %645 = vmatprep.subr.mxu1 %v800_v25 }
 0x152   :  { %646 = vmatpush3.msra.mxu1 %v171_v50 }
 0x153   :  { %648 = vmatmul.mubr.f32.vlgmr.msra.gmra.mrb[0].mxu1 %v132_v49 }
 0x222   :  { %v555_v57 = vpop.f32.mrb[0].mxu0 }
 0x223   :  { %v688_v58 = vpop.f32.mrb[1].mxu0 }
 0x226   :  { %v315_v60 = vpop.f32.mrb[0].mxu1 }
 0x227   :  { %v725_v61 = vadd.f32 %v315_v60, %v56_v59  ;;  %v649_v62 = vpop.f32.mrb[1].mxu1 }
 0x229   :  { %v726_v63 = vadd.f32 %v725_v61, %v555_v57 }
 0x22b   :  { %559 = vst [vmem:[#allocation5] sm:$0xff] %v726_v63 }
 0x22c   :  { %780 = shalt.err (!%p777_p12)
}
 0x22d   :  { %s781_s10 = scalar_lea.hbm %s938_s4, 128 }
 0x22e   :  { %p782_p13 = scmp.ne.s32.totalorder %s938_s4, %s781_s10  ;;  %p785_p0 = scmp.lt.u32.totalorder %s781_s10, %s938_s4 }
 0x230   :  { %p787_p1 = pnand %p785_p0, %p782_p13 }
 0x232   :  { %790 = shalt.err (!%p787_p1)
}
 0x233   :  { %569 = dma.vmem_to_hbm [thread:$0]  %s567_s6, 128, %s938_s4, [#allocation4]  }
 0x234   :  { %793 = dma.done.wait [#allocation4], 128  }
 0x235   :  { %794 = vsyncadd [#allocation4], 4294967168 }
 0x236   :  { %573 = vsyncpa [#allocation3], 1 }
 0x237   :  { %574 = vsyncpa [#allocation4], 1 }

</bundles_post_ra>
